<compile_context>
chip_gen: v7x
topology: tpu7x:2x2x1
jax: 0.10.0
libtpu: 0.0.40
codegen_flags: <defaults>
</compile_context>

<pallas_src>
import jax
import jax.numpy as jnp
import numpy as np
from jax import lax
from jax.experimental import pallas as pl
from jax.experimental.pallas import tpu as pltpu


def _round_up(x, m):
    return ((x + m - 1) // m) * m


def _conv2d_kernel(p_ref, w_ref, o_ref):
    """Single MXU matmul: out = W_aug @ patches_aug (bias folded in).

    p_ref: (K_pad, L)      im2col patches + ones row + zero pad rows,
                           L = N * HoWo_pad (lane-dense, multiple of 128)
    w_ref: (Cout, K_pad)   flattened weight + bias column + zero pad cols
    o_ref: (Cout, L)       output, channels on sublanes / (batch*spatial) on lanes
    """
    o_ref[...] = jnp.dot(
        w_ref[...], p_ref[...], preferred_element_type=jnp.float32
    ).astype(o_ref.dtype)


def _build_patches(x, KH, KW, K_pad, HoWo_pad):
    """(N, Cin, H, W) -> (K_pad, N*HoWo_pad).

    Row k = (kh*KW + kw)*Cin + cin for k < KH*KW*Cin, then one row of ones
    (for the bias), then zero rows up to K_pad.  Lane axis is batch-major:
    column n*HoWo_pad + s, with s < Ho*Wo valid and the rest zero padding.
    """
    N, Cin, H, W = x.shape
    Ho, Wo = H - KH + 1, W - KW + 1
    HoWo = Ho * Wo
    K = KH * KW * Cin

    taps = []
    for kh in range(KH):
        for kw in range(KW):
            tap = lax.slice(x, (0, 0, kh, kw), (N, Cin, kh + Ho, kw + Wo))
            taps.append(tap.reshape(N, Cin, HoWo))
    p = jnp.concatenate(taps, axis=1)                       # (N, K, HoWo)

    ones = jnp.ones((N, 1, HoWo), dtype=x.dtype)            # bias row (exact 1.0)
    p = jnp.concatenate([p, ones], axis=1)                  # (N, K+1, HoWo)

    # Zero-pad contraction rows to K_pad and lanes to HoWo_pad.
    p = jnp.pad(p, ((0, 0), (0, K_pad - (K + 1)), (0, HoWo_pad - HoWo)))
    # Fold batch into the lane axis: (K_pad, N*HoWo_pad).
    return jnp.transpose(p, (1, 0, 2)).reshape(K_pad, N * HoWo_pad)


def _conv2d_call(x, w_aug, KH, KW):
    N, Cin, H, W = x.shape
    Cout, K_pad = w_aug.shape
    Ho, Wo = H - KH + 1, W - KW + 1
    HoWo = Ho * Wo
    HoWo_pad = _round_up(HoWo, 128)
    L = N * HoWo_pad

    patches = _build_patches(x, KH, KW, K_pad, HoWo_pad)    # (K_pad, L)

    out_flat = pl.pallas_call(
        _conv2d_kernel,
        out_shape=jax.ShapeDtypeStruct((Cout, L), x.dtype),
        grid=(1,),
        in_specs=[
            pl.BlockSpec((K_pad, L), lambda i: (0, 0)),
            pl.BlockSpec((Cout, K_pad), lambda i: (0, 0)),
        ],
        out_specs=pl.BlockSpec((Cout, L), lambda i: (0, 0)),
        compiler_params=pltpu.CompilerParams(
            dimension_semantics=("arbitrary",)),
    )(patches, w_aug)

    # Un-fold: (Cout, N, HoWo_pad) -> drop lane padding -> (N, Cout, Ho, Wo).
    out = out_flat.reshape(Cout, N, HoWo_pad)[:, :, :HoWo]
    return jnp.transpose(out, (1, 0, 2)).reshape(N, Cout, Ho, Wo)


def make_conv2d(weight_oihw, bias):
    """Build a jitted conv fn with weight/bias layout prep hoisted out."""
    Cout, Cin, KH, KW = weight_oihw.shape
    K = KH * KW * Cin
    K_pad = _round_up(K + 1, 8)   # 27 taps + 1 bias row -> 32

    # Column k = (kh*KW + kw)*Cin + cin — matches _build_patches row order.
    w_flat = jnp.transpose(weight_oihw, (0, 2, 3, 1)).reshape(Cout, K)
    w_aug = jnp.concatenate([w_flat, bias.reshape(Cout, 1)], axis=1)  # bias col
    w_aug = jnp.pad(w_aug, ((0, 0), (0, K_pad - (K + 1))))            # (Cout, K_pad)

    @jax.jit
    def conv(x):
        return _conv2d_call(x, w_aug, KH, KW)

    return conv


if __name__ == "__main__":
    key = jax.random.PRNGKey(0)
    k_x, k_w, k_b = jax.random.split(key, 3)

    # Shapes consistent with Conv2d(3, 64, 3): N=2, Cin=3, H=W=16.
    N, Cin, H, W = 2, 3, 16, 16
    Cout, KH, KW = 64, 3, 3

    x = jax.random.normal(k_x, (N, Cin, H, W), dtype=jnp.float32)
    # Deterministic PyTorch-style uniform init with bound 1/sqrt(fan_in).
    fan_in = Cin * KH * KW
    bound = 1.0 / np.sqrt(fan_in)
    weight = jax.random.uniform(k_w, (Cout, Cin, KH, KW),
                                minval=-bound, maxval=bound, dtype=jnp.float32)
    bias = jax.random.uniform(k_b, (Cout,),
                              minval=-bound, maxval=bound, dtype=jnp.float32)

    conv = make_conv2d(weight, bias)
    out = jax.block_until_ready(conv(x))

    # Correctness check against XLA's native convolution (NCHW semantics).
    ref = lax.conv_general_dilated(
        x, weight, window_strides=(1, 1), padding="VALID",
        dimension_numbers=("NCHW", "OIHW", "NCHW"))
    ref = ref + bias[None, :, None, None]
    assert out.shape == (N, Cout, H - KH + 1, W - KW + 1)
    np.testing.assert_allclose(np.asarray(out), np.asarray(ref),
                               rtol=1e-5, atol=1e-5)

    print("KERNEL_OK")
</pallas_src>

<mosaic_0001>
module attributes {stable_mosaic.version = 11 : i64} {
  func.func @_conv2d_kernel(%arg0: i32, %arg1: memref<32x512xf32, #tpu.memory_space<vmem>>, %arg2: memref<64x32xf32, #tpu.memory_space<vmem>>, %arg3: memref<64x512xf32, #tpu.memory_space<vmem>>) attributes {dimension_semantics = [#tpu.dimension_semantics<arbitrary>], iteration_bounds = array<i64: 1>, scalar_prefetch = 0 : i64, scratch_operands = 0 : i64, tpu.core_type = #tpu.core_type<tc>, window_params = [{pipeline_mode = #tpu.pipeline_mode<synchronous>, transform_indices = @transform_0, window_bounds = array<i64: 32, 512>}, {pipeline_mode = #tpu.pipeline_mode<synchronous>, transform_indices = @transform_1, window_bounds = array<i64: 64, 32>}, {pipeline_mode = #tpu.pipeline_mode<synchronous>, transform_indices = @transform_2, window_bounds = array<i64: 64, 512>}]} {
    %c0 = arith.constant 0 : index
    %c0_0 = arith.constant 0 : index
    %0 = vector.load %arg2[%c0, %c0_0] : memref<64x32xf32, #tpu.memory_space<vmem>>, vector<64x32xf32>
    %c0_1 = arith.constant 0 : index
    %c0_2 = arith.constant 0 : index
    %1 = vector.load %arg1[%c0_1, %c0_2] : memref<32x512xf32, #tpu.memory_space<vmem>>, vector<32x512xf32>
    %cst = arith.constant dense<0.000000e+00> : vector<64x512xf32>
    %2 = tpu.matmul %0, %1, %cst {dimension_numbers = #tpu.dot_dimension_numbers<[1], [0], [0], [1], [0, 0, 1, 1], [], []>} : vector<64x32xf32>, vector<32x512xf32>, vector<64x512xf32> -> vector<64x512xf32>
    %c0_3 = arith.constant 0 : index
    %c0_4 = arith.constant 0 : index
    %3 = vector.load %arg3[%c0_3, %c0_4] : memref<64x512xf32, #tpu.memory_space<vmem>>, vector<64x512xf32>
    tpu.vector_store %arg3[%c0_3, %c0_4], %2 {strides = array<i32>} : memref<64x512xf32, #tpu.memory_space<vmem>>, vector<64x512xf32>,
    return
  }
  func.func @transform_0(%arg0: i32) -> (i32, i32) {
    %c0_i32 = arith.constant 0 : i32
    %c0_i32_0 = arith.constant 0 : i32
    %c0_i32_1 = arith.constant 0 : i32
    return %c0_i32, %c0_i32_0 : i32, i32
  }
  func.func @transform_1(%arg0: i32) -> (i32, i32) {
    %c0_i32 = arith.constant 0 : i32
    %c0_i32_0 = arith.constant 0 : i32
    %c0_i32_1 = arith.constant 0 : i32
    return %c0_i32, %c0_i32_0 : i32, i32
  }
  func.func @transform_2(%arg0: i32) -> (i32, i32) {
    %c0_i32 = arith.constant 0 : i32
    %c0_i32_0 = arith.constant 0 : i32
    %c0_i32_1 = arith.constant 0 : i32
    return %c0_i32, %c0_i32_0 : i32, i32
  }
}

</mosaic_0001>

<bundles_post_ra>
// kernel: conv.1
= control target key start
LH: loop header
LB: loop body
LE: loop exit
PB: predicated region body
PF: predicated region fallthrough
CT: control target
= control target key end

     0   :  { %v355_v3 = vmov 0.0   ;;  %vm35_vm0 = vcmask 261120   ;;  %s571_s0 = inlined_call_operand.vmem [shape: f32[32,512], index: 0, kind: input, shape index: {}]   ;;  %s572_s1 = inlined_call_operand.vmem [shape: f32[64,32], index: 1, kind: input, shape index: {}]   ;;  %s573_s2 = inlined_call_operand.vmem [shape: f32[64,512], index: 2, kind: output, shape index: {}]  }
   0x1   :  { %v20_v0 = vld [vmem:[%s571_s0 + $0x8] sm:$0xff]  ;;  %v22_v2 = vld [vmem:[%s571_s0 + $0x18] sm:$0xff]  ;;  %124 = vmatprep.mubr.f32.mxu0 %v355_v3  ;;  %237 = vmatprep.mubr.f32.mxu1 %v355_v3  ;;  %v19_v6 = vld [vmem:[%s571_s0] sm:$0xff] }
   0x2   :  { %v24_v1 = vld [vmem:[%s571_s0 + $0x28] sm:$0xff]  ;;  %v26_v5 = vld [vmem:[%s571_s0 + $0x38] sm:$0xff]  ;;  %v23_v7 = vld [vmem:[%s571_s0 + $0x20] sm:$0xff] }
   0x3   :  { %v338_v4 = vpack.c.bf16 %v24_v1, %v20_v0  ;;  %v346_v8 = vpack.c.bf16 %v26_v5, %v22_v2  ;;  %v340_v9 = vpack.c.bf16 %v23_v7, %v19_v6  ;;  %v21_v10 = vld [vmem:[%s571_s0 + $0x10] sm:$0xff]  ;;  %v28_v12 = vld [vmem:[%s571_s0 + $0x48] sm:$0xff]  ;;  %v30_v15 = vld [vmem:[%s571_s0 + $0x58] sm:$0xff] }
   0x4   :  { %v25_v11 = vld [vmem:[%s571_s0 + $0x30] sm:$0xff]  ;;  %v32_v14 = vld [vmem:[%s571_s0 + $0x68] sm:$0xff]  ;;  %v34_v16 = vld [vmem:[%s571_s0 + $0x78] sm:$0xff] }
   0x5   :  { %339 = vmatprep.subr.bf16.mxu0 %v338_v4  ;;  %v348_v13 = vpack.c.bf16 %v25_v11, %v21_v10  ;;  %347 = vmatprep.subr.bf16.mxu1 %v346_v8  ;;  %v342_v17 = vpack.c.bf16 %v32_v14, %v28_v12  ;;  %v350_v18 = vpack.c.bf16 %v34_v16, %v30_v15  ;;  %v27_v19 = vld [vmem:[%s571_s0 + $0x40] sm:$0xff]  ;;  %v29_v21 = vld [vmem:[%s571_s0 + $0x50] sm:$0xff]  ;;  %v12_v26 = vld [vmem:[%s572_s1 + $0x8] sm:$0xff] }
   0x6   :  { %341 = vmatpush1.bf16.msra.mxu0 %v340_v9  ;;  %v31_v20 = vld [vmem:[%s571_s0 + $0x60] sm:$0xff]  ;;  %v33_v23 = vld [vmem:[%s571_s0 + $0x70] sm:$0xff]  ;;  %v14_v28 = vld [vmem:[%s572_s1 + $0x18] sm:$0xff] }
   0x7   :  { %349 = vmatpush1.bf16.msra.mxu1 %v348_v13  ;;  %v344_v22 = vpack.c.bf16 %v31_v20, %v27_v19  ;;  %343 = vmatprep.subr.bf16.mxu0 %v342_v17  ;;  %v352_v24 = vpack.c.bf16 %v33_v23, %v29_v21  ;;  %v11_v25 = vld [vmem:[%s572_s1] sm:$0xff]  ;;  %v13_v27 = vld [vmem:[%s572_s1 + $0x10] sm:$0xff]  ;;  %v16_v30 = vld [vmem:[%s572_s1 + $0x28] sm:$0xff] }
   0x8   :  { %351 = vmatprep.subr.bf16.mxu1 %v350_v18  ;;  %v15_v29 = vld [vmem:[%s572_s1 + $0x20] sm:$0xff]  ;;  %v17_v31 = vld [vmem:[%s572_s1 + $0x30] sm:$0xff]  ;;  %v18_v32 = vld [vmem:[%s572_s1 + $0x38] sm:$0xff] }
   0xa   :  { %345 = vmatpush1.bf16.msra.mxu0 %v344_v22 }
   0xb   :  { %353 = vmatpush1.bf16.msra.mxu1 %v352_v24 }
   0xd   :  { %322 = vmatmul.mubr.msk.f32.vlgmr.msra.gmra.mrb[0].mxu0 %vm35_vm0, %v11_v25 }
   0xe   :  { %330 = vmatmul.mubr.msk.f32.vlgmr.msra.gmra.mrb[0].mxu1 %vm35_vm0, %v11_v25  ;;  %130 = vmatprep.mubr.f32.mxu0 %v355_v3 }
   0xf   :  { %243 = vmatprep.mubr.f32.mxu1 %v355_v3 }
  0x11   :  { %323 = vmatmul.mubr.msk.f32.gmra.mrb[2].mxu0 %vm35_vm0, %v12_v26 }
  0x12   :  { %331 = vmatmul.mubr.msk.f32.gmra.mrb[2].mxu1 %vm35_vm0, %v12_v26  ;;  %136 = vmatprep.mubr.f32.mxu0 %v355_v3 }
  0x13   :  { %249 = vmatprep.mubr.f32.mxu1 %v355_v3 }
  0x15   :  { %324 = vmatmul.mubr.msk.f32.gmra.mrb[4].mxu0 %vm35_vm0, %v13_v27 }
  0x16   :  { %332 = vmatmul.mubr.msk.f32.gmra.mrb[4].mxu1 %vm35_vm0, %v13_v27  ;;  %142 = vmatprep.mubr.f32.mxu0 %v355_v3 }
  0x17   :  { %255 = vmatprep.mubr.f32.mxu1 %v355_v3 }
  0x19   :  { %325 = vmatmul.mubr.msk.f32.gmra.mrb[6].mxu0 %vm35_vm0, %v14_v28 }
  0x1a   :  { %333 = vmatmul.mubr.msk.f32.gmra.mrb[6].mxu1 %vm35_vm0, %v14_v28  ;;  %148 = vmatprep.mubr.f32.mxu0 %v355_v3 }
  0x1b   :  { %261 = vmatprep.mubr.f32.mxu1 %v355_v3 }
  0x1d   :  { %326 = vmatmul.mubr.msk.f32.gmra.mrb[8].mxu0 %vm35_vm0, %v15_v29 }
  0x1e   :  { %334 = vmatmul.mubr.msk.f32.gmra.mrb[8].mxu1 %vm35_vm0, %v15_v29  ;;  %154 = vmatprep.mubr.f32.mxu0 %v355_v3 }
  0x1f   :  { %267 = vmatprep.mubr.f32.mxu1 %v355_v3 }
  0x21   :  { %327 = vmatmul.mubr.msk.f32.gmra.mrb[10].mxu0 %vm35_vm0, %v16_v30 }
  0x22   :  { %335 = vmatmul.mubr.msk.f32.gmra.mrb[10].mxu1 %vm35_vm0, %v16_v30  ;;  %160 = vmatprep.mubr.f32.mxu0 %v355_v3 }
  0x23   :  { %273 = vmatprep.mubr.f32.mxu1 %v355_v3 }
  0x25   :  { %328 = vmatmul.mubr.msk.f32.gmra.mrb[12].mxu0 %vm35_vm0, %v17_v31 }
  0x26   :  { %336 = vmatmul.mubr.msk.f32.gmra.mrb[12].mxu1 %vm35_vm0, %v17_v31  ;;  %166 = vmatprep.mubr.f32.mxu0 %v355_v3 }
  0x27   :  { %279 = vmatprep.mubr.f32.mxu1 %v355_v3 }
  0x29   :  { %329 = vmatmul.mubr.msk.f32.gmra.mrb[14].mxu0 %vm35_vm0, %v18_v32 }
  0x2a   :  { %337 = vmatmul.mubr.msk.f32.gmra.mrb[14].mxu1 %vm35_vm0, %v18_v32 }
  0xe0   :  { %v126_v33 = vpop.f32.mrb[0].mxu0 }
  0xe1   :  { %286 = vst [vmem:[%s573_s2] sm:$0xff] %v126_v33  ;;  %v239_v34 = vpop.f32.mrb[0].mxu1  ;;  %v128_v35 = vpop.f32.mrb[1].mxu0 }
  0xe2   :  { %288 = vst [vmem:[%s573_s2 + $0x10] sm:$0xff] %v239_v34  ;;  %287 = vst [vmem:[%s573_s2 + $0x8] sm:$0xff] %v128_v35  ;;  %v241_v36 = vpop.f32.mrb[1].mxu1 }
  0xe3   :  { %289 = vst [vmem:[%s573_s2 + $0x18] sm:$0xff] %v241_v36 }
  0xe4   :  { %v132_v37 = vpop.f32.mrb[2].mxu0 }
  0xe5   :  { %290 = vst [vmem:[%s573_s2 + $0x20] sm:$0xff] %v132_v37  ;;  %v245_v38 = vpop.f32.mrb[2].mxu1  ;;  %v134_v39 = vpop.f32.mrb[3].mxu0 }
  0xe6   :  { %292 = vst [vmem:[%s573_s2 + $0x30] sm:$0xff] %v245_v38  ;;  %291 = vst [vmem:[%s573_s2 + $0x28] sm:$0xff] %v134_v39  ;;  %v247_v40 = vpop.f32.mrb[3].mxu1 }
  0xe7   :  { %293 = vst [vmem:[%s573_s2 + $0x38] sm:$0xff] %v247_v40 }
  0xe8   :  { %v138_v41 = vpop.f32.mrb[4].mxu0 }
  0xe9   :  { %294 = vst [vmem:[%s573_s2 + $0x40] sm:$0xff] %v138_v41  ;;  %v251_v42 = vpop.f32.mrb[4].mxu1  ;;  %v140_v43 = vpop.f32.mrb[5].mxu0 }
  0xea   :  { %296 = vst [vmem:[%s573_s2 + $0x50] sm:$0xff] %v251_v42  ;;  %295 = vst [vmem:[%s573_s2 + $0x48] sm:$0xff] %v140_v43  ;;  %v253_v44 = vpop.f32.mrb[5].mxu1 }
  0xeb   :  { %297 = vst [vmem:[%s573_s2 + $0x58] sm:$0xff] %v253_v44 }
  0xec   :  { %v144_v45 = vpop.f32.mrb[6].mxu0 }
  0xed   :  { %298 = vst [vmem:[%s573_s2 + $0x60] sm:$0xff] %v144_v45  ;;  %v257_v46 = vpop.f32.mrb[6].mxu1  ;;  %v146_v47 = vpop.f32.mrb[7].mxu0 }
  0xee   :  { %300 = vst [vmem:[%s573_s2 + $0x70] sm:$0xff] %v257_v46  ;;  %299 = vst [vmem:[%s573_s2 + $0x68] sm:$0xff] %v146_v47  ;;  %v259_v48 = vpop.f32.mrb[7].mxu1 }
  0xef   :  { %301 = vst [vmem:[%s573_s2 + $0x78] sm:$0xff] %v259_v48 }
  0xf0   :  { %v150_v49 = vpop.f32.mrb[8].mxu0 }
  0xf1   :  { %302 = vst [vmem:[%s573_s2 + $0x80] sm:$0xff] %v150_v49  ;;  %v263_v50 = vpop.f32.mrb[8].mxu1  ;;  %v152_v51 = vpop.f32.mrb[9].mxu0 }
  0xf2   :  { %304 = vst [vmem:[%s573_s2 + $0x90] sm:$0xff] %v263_v50  ;;  %303 = vst [vmem:[%s573_s2 + $0x88] sm:$0xff] %v152_v51  ;;  %v265_v52 = vpop.f32.mrb[9].mxu1 }
  0xf3   :  { %305 = vst [vmem:[%s573_s2 + $0x98] sm:$0xff] %v265_v52 }
  0xf4   :  { %v156_v53 = vpop.f32.mrb[10].mxu0 }
  0xf5   :  { %306 = vst [vmem:[%s573_s2 + $0xa0] sm:$0xff] %v156_v53  ;;  %v269_v54 = vpop.f32.mrb[10].mxu1  ;;  %v158_v55 = vpop.f32.mrb[11].mxu0 }
  0xf6   :  { %308 = vst [vmem:[%s573_s2 + $0xb0] sm:$0xff] %v269_v54  ;;  %307 = vst [vmem:[%s573_s2 + $0xa8] sm:$0xff] %v158_v55  ;;  %v271_v56 = vpop.f32.mrb[11].mxu1 }
  0xf7   :  { %309 = vst [vmem:[%s573_s2 + $0xb8] sm:$0xff] %v271_v56 }
  0xf8   :  { %v162_v57 = vpop.f32.mrb[12].mxu0 }
  0xf9   :  { %310 = vst [vmem:[%s573_s2 + $0xc0] sm:$0xff] %v162_v57  ;;  %v275_v58 = vpop.f32.mrb[12].mxu1  ;;  %v164_v59 = vpop.f32.mrb[13].mxu0 }
  0xfa   :  { %312 = vst [vmem:[%s573_s2 + $0xd0] sm:$0xff] %v275_v58  ;;  %311 = vst [vmem:[%s573_s2 + $0xc8] sm:$0xff] %v164_v59  ;;  %v277_v60 = vpop.f32.mrb[13].mxu1 }
  0xfb   :  { %313 = vst [vmem:[%s573_s2 + $0xd8] sm:$0xff] %v277_v60 }
  0xfc   :  { %v168_v61 = vpop.f32.mrb[14].mxu0 }
  0xfd   :  { %314 = vst [vmem:[%s573_s2 + $0xe0] sm:$0xff] %v168_v61  ;;  %v281_v62 = vpop.f32.mrb[14].mxu1  ;;  %v170_v63 = vpop.f32.mrb[15].mxu0 }
  0xfe   :  { %316 = vst [vmem:[%s573_s2 + $0xf0] sm:$0xff] %v281_v62  ;;  %315 = vst [vmem:[%s573_s2 + $0xe8] sm:$0xff] %v170_v63  ;;  %v283_v0 = vpop.f32.mrb[15].mxu1 }
  0xff   :  { %317 = vst [vmem:[%s573_s2 + $0xf8] sm:$0xff] %v283_v0 }

</bundles_post_ra>
